<compile_context>
chip_gen: v5e
topology: v5e:2x2
jax: 0.10.0
libtpu: 0.0.40
codegen_flags: <defaults>
</compile_context>

<pallas_src>
import jax
import jax.numpy as jnp
from jax.experimental import pallas as pl
from jax.experimental.pallas import tpu as pltpu


def _round_up(n, m):
    return ((n + m - 1) // m) * m


def _mlp_kernel(x_ref, w1_ref, b1_ref, w2_ref, b2_ref, o_ref):
    # Layer 1: (tm, in) @ (in, hid_p) on the MXU, bf16 operands / f32 accumulate.
    h = jnp.dot(x_ref[...], w1_ref[...], preferred_element_type=jnp.float32)
    h = jnp.maximum(h + b1_ref[...], 0.0)  # bias + ReLU in f32
    # Layer 2: (tm, hid_p) @ (hid_p, out_p), bf16 operands / f32 accumulate.
    out = jnp.dot(h.astype(w2_ref.dtype), w2_ref[...],
                  preferred_element_type=jnp.float32)
    o_ref[...] = (out + b2_ref[...]).astype(o_ref.dtype)


def linear_qnet_forward(x, w1, b1, w2, b2, *, tm=512):
    """Fused forward pass of LinearQNet for a (possibly large) batch.

    tm: batch-tile rows per grid step (512 default per v6e/v5e guidance; pass a
    smaller value on v7x or tiny batches — it is clamped to the padded batch).
    """
    batch, in_f = x.shape
    hid = w1.shape[1]
    out_f = w2.shape[1]
    out_dtype = x.dtype

    # Lane-dense padded feature dims; sublane-aligned batch tile.
    hid_p = _round_up(hid, 128)
    out_p = _round_up(out_f, 128)
    tm = min(tm, _round_up(batch, 8))
    batch_p = _round_up(batch, tm)

    # Zero-pad (keeps math exact on the valid slice) and cast matmul operands
    # to bf16 to halve MXU work and the streamed-x HBM bytes.
    x_p = jnp.pad(x, ((0, batch_p - batch), (0, 0))).astype(jnp.bfloat16)
    w1_p = jnp.pad(w1, ((0, 0), (0, hid_p - hid))).astype(jnp.bfloat16)
    w2_p = jnp.pad(w2, ((0, hid_p - hid), (0, out_p - out_f))).astype(jnp.bfloat16)
    b1_p = jnp.pad(b1, (0, hid_p - hid)).astype(jnp.float32).reshape(1, hid_p)
    b2_p = jnp.pad(b2, (0, out_p - out_f)).astype(jnp.float32).reshape(1, out_p)

    grid = (batch_p // tm,)
    out_full = pl.pallas_call(
        _mlp_kernel,
        out_shape=jax.ShapeDtypeStruct((batch_p, out_p), out_dtype),
        grid=grid,
        in_specs=[
            pl.BlockSpec((tm, in_f), lambda i: (i, 0)),         # x: streamed per tile
            pl.BlockSpec((in_f, hid_p), lambda i: (0, 0)),      # W1: VMEM-resident
            pl.BlockSpec((1, hid_p), lambda i: (0, 0)),         # b1: VMEM-resident
            pl.BlockSpec((hid_p, out_p), lambda i: (0, 0)),     # W2: VMEM-resident
            pl.BlockSpec((1, out_p), lambda i: (0, 0)),         # b2: VMEM-resident
        ],
        out_specs=pl.BlockSpec((tm, out_p), lambda i: (i, 0)),  # lane-dense output
        compiler_params=pltpu.CompilerParams(
            dimension_semantics=("parallel",)),                 # shard batch across TCs
    )(x_p, w1_p, b1_p, w2_p, b2_p)
    return out_full[:batch, :out_f]


def init_params(key, input_size, hidden_size, output_size, dtype=jnp.float32):
    """Deterministic init matching nn.Linear's default U(-1/sqrt(fan_in), 1/sqrt(fan_in))."""
    k1, k2, k3, k4 = jax.random.split(key, 4)
    bound1 = 1.0 / jnp.sqrt(input_size)
    bound2 = 1.0 / jnp.sqrt(hidden_size)
    w1 = jax.random.uniform(k1, (input_size, hidden_size), dtype, -bound1, bound1)
    b1 = jax.random.uniform(k2, (hidden_size,), dtype, -bound1, bound1)
    w2 = jax.random.uniform(k3, (hidden_size, output_size), dtype, -bound2, bound2)
    b2 = jax.random.uniform(k4, (output_size,), dtype, -bound2, bound2)
    return w1, b1, w2, b2


if __name__ == "__main__":
    # Q-net dims: input=16, hidden=32, output=4. batch=256 so the batch grid is
    # actually exercised (tm=128 -> 2 grid steps) while data stays tiny.
    batch, input_size, hidden_size, output_size = 256, 16, 32, 4

    key = jax.random.PRNGKey(0)
    kx, kp = jax.random.split(key)
    x = jax.random.normal(kx, (batch, input_size), jnp.float32)
    w1, b1, w2, b2 = init_params(kp, input_size, hidden_size, output_size)

    out = linear_qnet_forward(x, w1, b1, w2, b2, tm=128)
    out = jax.block_until_ready(out)

    # Reference check in plain JAX (same math as the PyTorch forward, f32).
    ref = jnp.maximum(x @ w1 + b1, 0.0) @ w2 + b2
    assert out.shape == (batch, output_size)
    # bf16 MXU operands vs f32 reference -> slightly relaxed tolerance.
    err = float(jnp.max(jnp.abs(out - ref)))
    assert jnp.allclose(out, ref, atol=3e-2, rtol=3e-2), f"max abs err {err}"

    print("KERNEL_OK")
</pallas_src>

<mosaic_0001>
module attributes {stable_mosaic.version = 11 : i64} {
  func.func @_mlp_kernel(%arg0: i32, %arg1: memref<128x16xbf16, #tpu.memory_space<vmem>>, %arg2: memref<16x128xbf16, #tpu.memory_space<vmem>>, %arg3: memref<1x128xf32, #tpu.memory_space<vmem>>, %arg4: memref<128x128xbf16, #tpu.memory_space<vmem>>, %arg5: memref<1x128xf32, #tpu.memory_space<vmem>>, %arg6: memref<128x128xf32, #tpu.memory_space<vmem>>) attributes {dimension_semantics = [#tpu.dimension_semantics<parallel>], iteration_bounds = array<i64: 2>, scalar_prefetch = 0 : i64, scratch_operands = 0 : i64, tpu.core_type = #tpu.core_type<tc>, window_params = [{transform_indices = @transform_0, window_bounds = array<i64: 128, 16>}, {pipeline_mode = #tpu.pipeline_mode<synchronous>, transform_indices = @transform_1, window_bounds = array<i64: 16, 128>}, {pipeline_mode = #tpu.pipeline_mode<synchronous>, transform_indices = @transform_2, window_bounds = array<i64: 1, 128>}, {pipeline_mode = #tpu.pipeline_mode<synchronous>, transform_indices = @transform_3, window_bounds = array<i64: 128, 128>}, {pipeline_mode = #tpu.pipeline_mode<synchronous>, transform_indices = @transform_4, window_bounds = array<i64: 1, 128>}, {transform_indices = @transform_5, window_bounds = array<i64: 128, 128>}]} {
    %c0 = arith.constant 0 : index
    %c0_0 = arith.constant 0 : index
    %0 = vector.load %arg1[%c0, %c0_0] : memref<128x16xbf16, #tpu.memory_space<vmem>>, vector<128x16xbf16>
    %c0_1 = arith.constant 0 : index
    %c0_2 = arith.constant 0 : index
    %1 = vector.load %arg2[%c0_1, %c0_2] : memref<16x128xbf16, #tpu.memory_space<vmem>>, vector<16x128xbf16>
    %cst = arith.constant dense<0.000000e+00> : vector<128x128xf32>
    %2 = tpu.matmul %0, %1, %cst {dimension_numbers = #tpu.dot_dimension_numbers<[1], [0], [0], [1], [0, 0, 1, 1], [], []>} : vector<128x16xbf16>, vector<16x128xbf16>, vector<128x128xf32> -> vector<128x128xf32>
    %c0_3 = arith.constant 0 : index
    %c0_4 = arith.constant 0 : index
    %3 = vector.load %arg3[%c0_3, %c0_4] : memref<1x128xf32, #tpu.memory_space<vmem>>, vector<1x128xf32>
    %4 = vector.broadcast %3 : vector<1x128xf32> to vector<128x128xf32>
    %5 = arith.addf %2, %4 : vector<128x128xf32>
    %cst_5 = arith.constant 0.000000e+00 : f32
    %6 = vector.broadcast %cst_5 : f32 to vector<128x128xf32>
    %7 = arith.maximumf %5, %6 : vector<128x128xf32>
    %8 = arith.truncf %7 : vector<128x128xf32> to vector<128x128xbf16>
    %c0_6 = arith.constant 0 : index
    %c0_7 = arith.constant 0 : index
    %9 = vector.load %arg4[%c0_6, %c0_7] : memref<128x128xbf16, #tpu.memory_space<vmem>>, vector<128x128xbf16>
    %cst_8 = arith.constant dense<0.000000e+00> : vector<128x128xf32>
    %10 = tpu.matmul %8, %9, %cst_8 {dimension_numbers = #tpu.dot_dimension_numbers<[1], [0], [0], [1], [0, 0, 1, 1], [], []>} : vector<128x128xbf16>, vector<128x128xbf16>, vector<128x128xf32> -> vector<128x128xf32>
    %c0_9 = arith.constant 0 : index
    %c0_10 = arith.constant 0 : index
    %11 = vector.load %arg5[%c0_9, %c0_10] : memref<1x128xf32, #tpu.memory_space<vmem>>, vector<1x128xf32>
    %12 = vector.broadcast %11 : vector<1x128xf32> to vector<128x128xf32>
    %13 = arith.addf %10, %12 : vector<128x128xf32>
    %c0_11 = arith.constant 0 : index
    %c0_12 = arith.constant 0 : index
    %14 = vector.load %arg6[%c0_11, %c0_12] : memref<128x128xf32, #tpu.memory_space<vmem>>, vector<128x128xf32>
    tpu.vector_store %arg6[%c0_11, %c0_12], %13 {strides = array<i32>} : memref<128x128xf32, #tpu.memory_space<vmem>>, vector<128x128xf32>,
    return
  }
  func.func @transform_0(%arg0: i32) -> (i32, i32) {
    %c0_i32 = arith.constant 0 : i32
    %c0_i32_0 = arith.constant 0 : i32
    return %arg0, %c0_i32 : i32, i32
  }
  func.func @transform_1(%arg0: i32) -> (i32, i32) {
    %c0_i32 = arith.constant 0 : i32
    %c0_i32_0 = arith.constant 0 : i32
    %c0_i32_1 = arith.constant 0 : i32
    return %c0_i32, %c0_i32_0 : i32, i32
  }
  func.func @transform_2(%arg0: i32) -> (i32, i32) {
    %c0_i32 = arith.constant 0 : i32
    %c0_i32_0 = arith.constant 0 : i32
    %c0_i32_1 = arith.constant 0 : i32
    return %c0_i32, %c0_i32_0 : i32, i32
  }
  func.func @transform_3(%arg0: i32) -> (i32, i32) {
    %c0_i32 = arith.constant 0 : i32
    %c0_i32_0 = arith.constant 0 : i32
    %c0_i32_1 = arith.constant 0 : i32
    return %c0_i32, %c0_i32_0 : i32, i32
  }
  func.func @transform_4(%arg0: i32) -> (i32, i32) {
    %c0_i32 = arith.constant 0 : i32
    %c0_i32_0 = arith.constant 0 : i32
    %c0_i32_1 = arith.constant 0 : i32
    return %c0_i32, %c0_i32_0 : i32, i32
  }
  func.func @transform_5(%arg0: i32) -> (i32, i32) {
    %c0_i32 = arith.constant 0 : i32
    %c0_i32_0 = arith.constant 0 : i32
    return %arg0, %c0_i32 : i32, i32
  }
}

</mosaic_0001>

<bundles_post_ra>
// kernel: tpu_custom_call.1
= control target key start
LH: loop header
LB: loop body
LE: loop exit
PB: predicated region body
PF: predicated region fallthrough
CT: control target
= control target key end

     0   :  { %10 = vsyncpa [#allocation3], 0  ;;  %s1006_s0 = inlined_call_operand.vmem [shape: bf16[256,16], index: 0, kind: input, shape index: {}]   ;;  %s1007_s1 = inlined_call_operand.vmem [shape: bf16[16,128], index: 1, kind: input, shape index: {}]   ;;  %s1008_s2 = inlined_call_operand.vmem [shape: f32[1,128], index: 2, kind: input, shape index: {}]   ;;  %s1009_s3 = inlined_call_operand.vmem [shape: bf16[128,128], index: 3, kind: input, shape index: {}]   ;;  %s1010_s4 = inlined_call_operand.vmem [shape: f32[1,128], index: 4, kind: input, shape index: {}]   ;;  %s1011_s5 = inlined_call_operand.hbm [shape: f32[256,128], index: 5, kind: output, shape index: {}]  }
   0x1   :  { %12 = vsyncpa [#allocation3 + $0x1], 0  ;;  %s858_s18 = smov 0   ;;  %s860_s19 = smov 0  }
   0x2   :  { %s862_s20 = smov 0   ;;  %s864_s21 = smov 0  }
   0x3 LB: > { %s879_s22 = sadd.s32 4294967295, %s824_s21   ;;  %s604_s23 = sadd.s32 4294967294, %s824_s21   ;;  %s824_s21 = sphi %s864_s21, %s1017_s21   ;;  %s820_s20 = sphi %s862_s20, %s1016_s20   ;;  %s816_s19 = sphi %s860_s19, %s1015_s19   ;;  %s812_s18 = sphi %s858_s18, %s1014_s18  }
   0x4   : > { %s883_s24 = sadd.s32 1, %s824_s21   ;;  %s135_s25 = sadd.s32 1, %s820_s20 }
   0x5   : > { %s132_s26 = ssub.s32 %s824_s21, %s883_s24  ;;  %p145_p0 = scmp.ne.s32.totalorder %s820_s20, %s816_s19 }
   0x6   : > { %p133_p1 = scmp.eq.s32.totalorder %s132_s26, 0  ;;  %p146_p2 = scmp.eq.s32.totalorder %s879_s22, 1 }
   0x7   : > { %p151_p3 = scmp.ne.s32.totalorder %s816_s19, %s812_s18  ;;  %p152_p4 = scmp.eq.s32.totalorder %s604_s23, 1 }
   0x8   : > { %s894_s27 = scalar_select %p133_p1, %s820_s20, %s135_s25  }
   0x9   : > { %p896_p5 = por %p146_p2, %p145_p0  ;;  %p900_p6 = por %p152_p4, %p151_p3 }
   0xa   : > { %p607_p7 = scmp.ge.s32.totalorder %s824_s21, 1  ;;  %p191_p8 = scmp.lt.s32.totalorder %s824_s21, 3 }
   0xc   : > { %p192_p9 = pnand %p607_p7, %p191_p8 }
   0xd   : > { %s609_s7 = sshll.u32 (!%p192_p9), %s879_s22, 4  ;;  %s216_s14 = sand.u32 (!%p192_p9), 1, %s816_s19  }
   0xe   : > { %195 = sbr.rel (%p192_p9) target bundleno = 421 (0x1a5), region = 40  ;;  %p220_p10 = scmp.lt.s32.totalorder (!%p192_p9), %s609_s7, 31 }
   0xf   : > { %s608_s15 = sshll.u32 (!%p192_p9), %s216_s14, 7  ;;  %s709_s25 = sshll.u32 (!%p192_p9), %s879_s22, 7 }
  0x10   : > { %s954_s23 = scalar_lea.vmem (!%p192_p9), [#allocation2], %s608_s15  ;;  %s538_s6 = scalar_lea.hbm (!%p192_p9), %s1011_s5, %s709_s25 }
  0x11   : > { %s527_s9 = scalar_lea.sflag (!%p192_p9), [#allocation3], %s216_s14  ;;  %s782_s13 = scalar_lea.hbm (!%p192_p9), %s1011_s5, 256 }
  0x13   : > { %v700_v0 = vld [vmem:[%s1007_s1] sm:$0xff]  ;;  %s1019_s7 = smov (!%p220_p10, %s609_s7), 31  ;;  %vm295_vm0 = vcmask 130048   ;;  %v708_v5 = vld [vmem:[%s1009_s3 + $0x38] sm:$0xff]  ;;  %v707_v6 = vld [vmem:[%s1009_s3 + $0x30] sm:$0xff] }
  0x14   : > { %327 = vmatpush.bf16.msra.mxu0 %v700_v0  ;;  %710 = vmatpush.bf16.msra.mxu3 %v700_v0  ;;  %s610_s8 = sshll.u32 %s1019_s7, 2  ;;  %v706_v7 = vld [vmem:[%s1009_s3 + $0x28] sm:$0xff]  ;;  %v705_v9 = vld [vmem:[%s1009_s3 + $0x20] sm:$0xff]  ;;  %v704_v13 = vld [vmem:[%s1009_s3 + $0x18] sm:$0xff]  ;;  %s539_s7 = sshll.u32 %s954_s23, 4  ;;  %s540_s7 = int_to_ptr.vmem [resolvable:$true] %s539_s7 }
  0x15   : > { %s223_s11 = scalar_lea.vmem %s1006_s0, %s610_s8  ;;  %461 = vmatpush.bf16.msra.mxu1 %v708_v5  ;;  %711 = vmatpush.bf16.msra.mxu2 %v708_v5  ;;  %v703_v14 = vld [vmem:[%s1009_s3 + $0x10] sm:$0xff]  ;;  %v702_v15 = vld [vmem:[%s1009_s3 + $0x8] sm:$0xff]  ;;  %v701_v16 = vld [vmem:[%s1009_s3] sm:$0xff]  ;;  %s541_s8 = sshll.u32 %s538_s6, 4  ;;  %s542_s8 = int_to_ptr.hbm [resolvable:$true] %s541_s8 }
  0x16   : > { %v692_v1 = vld [vmem:[%s223_s11] sm:$0xff]  ;;  %v693_v2 = vld [vmem:[%s223_s11 + $0x8] sm:$0xff]  ;;  %v694_v3 = vld [vmem:[%s223_s11 + $0x10] sm:$0xff]  ;;  %s776_s10 = sshra.s32 %s542_s8, 4  ;;  %s777_s10 = int_to_ptr.hbm [resolvable:$true] %s776_s10 }
  0x17   : > { %647 = vmatmul.msk.bf16.vlgmr.msra.gmra.mxu0 %vm295_vm0, %v692_v1  ;;  %v697_v4 = vld [vmem:[%s223_s11 + $0x28] sm:$0xff]  ;;  %v695_v8 = vld [vmem:[%s223_s11 + $0x18] sm:$0xff]  ;;  %v698_v10 = vld [vmem:[%s223_s11 + $0x30] sm:$0xff]  ;;  %s778_s22 = scalar_lea.hbm %s777_s10, 128  ;;  %p783_p0 = scmp.lt.s32.totalorder %s777_s10, %s1011_s5 }
  0x18   : > { %652 = vmatmul.msk.bf16.vlgmr.msra.gmra.mxu3 %vm295_vm0, %v697_v4  ;;  %v696_v11 = vld [vmem:[%s223_s11 + $0x20] sm:$0xff]  ;;  %v699_v12 = vld [vmem:[%s223_s11 + $0x38] sm:$0xff]  ;;  %p779_p11 = scmp.ne.s32.totalorder %s777_s10, %s778_s22  ;;  %p784_p1 = scmp.lt.s32.totalorder %s782_s13, %s778_s22 }
  0x19   : > { %462 = vmatpush.bf16.msra.mxu1 %v707_v6  ;;  %712 = vmatpush.bf16.msra.mxu2 %v707_v6  ;;  %v760_v18 = vld [vmem:[%s1008_s2] ss:$0 sm:$0xff] }
  0x1a   : > { %p780_p12 = pnand %p779_p11, %p896_p5  ;;  %p785_p2 = por %p784_p1, %p783_p0 }
  0x1c   : > { %p781_p13 = pneg %p780_p12 }
  0x1d   : > { %463 = vmatpush.bf16.msra.mxu1 %v706_v7  ;;  %713 = vmatpush.bf16.msra.mxu2 %v706_v7 }
  0x1e   : > { %p786_p3 = pnand %p785_p2, %p781_p13 }
  0x21   : > { %464 = vmatpush.bf16.msra.mxu1 %v705_v9  ;;  %714 = vmatpush.bf16.msra.mxu2 %v705_v9 }
  0x25   : > { %465 = vmatpush.bf16.msra.mxu1 %v704_v13  ;;  %715 = vmatpush.bf16.msra.mxu2 %v704_v13 }
  0x27   : > { %648 = vmatmul.msk.bf16.gmra.mxu0 %vm295_vm0, %v693_v2 }
  0x28   : > { %653 = vmatmul.msk.bf16.gmra.mxu3 %vm295_vm0, %v698_v10  ;;  %v761_v10 = vld [vmem:[%s1010_s4] ss:$0 sm:$0xff] }
  0x29   : > { %466 = vmatpush.bf16.msra.mxu1 %v703_v14  ;;  %716 = vmatpush.bf16.msra.mxu2 %v703_v14 }
  0x2d   : > { %467 = vmatpush.bf16.msra.mxu1 %v702_v15  ;;  %717 = vmatpush.bf16.msra.mxu2 %v702_v15 }
  0x31   : > { %468 = vmatpush.bf16.msra.mxu1 %v701_v16  ;;  %718 = vmatpush.bf16.msra.mxu2 %v701_v16 }
  0x37   : > { %649 = vmatmul.msk.bf16.gmra.mxu0 %vm295_vm0, %v694_v3 }
  0x38   : > { %654 = vmatmul.msk.bf16.gmra.mxu3 %vm295_vm0, %v699_v12 }
  0x47   : > { %650 = vmatmul.msk.bf16.gmra.mxu0 %vm295_vm0, %v695_v8 }
  0x57   : > { %651 = vmatmul.msk.bf16.gmra.mxu0 %vm295_vm0, %v696_v11 }
  0x94   : > { %v329_v17 = vpop.f32.mrf.mxu0 }
  0x95   : > { %v330_v19 = vadd.f32 %v760_v18, %v329_v17 }
  0x97   : > { %v369_v22 = vmax.f32 %v330_v19, 0.0 }
  0x9b   : > { %v354_v47 = vpop.f32.mrf.mxu3 }
  0x9c   : > { %v331_v20 = vpop.f32.mrf.mxu0  ;;  %v355_v56 = vadd.f32 %v760_v18, %v354_v47 }
  0x9d   : > { %v332_v21 = vadd.f32 %v760_v18, %v331_v20 }
  0x9e   : > { %v379_v58 = vmax.f32 %v355_v56, 0.0 }
  0x9f   : > { %v370_v23 = vmax.f32 %v332_v21, 0.0 }
  0xa1   : > { %v385_v24 = vpack.c.bf16 %v370_v23, %v369_v22 }
  0xa3   : > { %469 = vmatmul.bf16.vlgmr.msra.gmra.mxu1 %v385_v24  ;;  %v356_v51 = vpop.f32.mrf.mxu3 }
  0xa4   : > { %v334_v25 = vpop.f32.mrf.mxu0  ;;  %v357_v57 = vadd.f32 %v760_v18, %v356_v51 }
  0xa5   : > { %v335_v26 = vadd.f32 %v760_v18, %v334_v25 }
  0xa6   : > { %v380_v59 = vmax.f32 %v357_v57, 0.0 }
  0xa7   : > { %v371_v29 = vmax.f32 %v335_v26, 0.0 }
  0xa8   : > { %v390_v60 = vpack.c.bf16 %v380_v59, %v379_v58 }
  0xab   : > { %v359_v55 = vpop.f32.mrf.mxu3 }
  0xac   : > { %v336_v27 = vpop.f32.mrf.mxu0  ;;  %v360_v62 = vadd.f32 %v760_v18, %v359_v55 }
  0xad   : > { %v337_v28 = vadd.f32 %v760_v18, %v336_v27 }
  0xae   : > { %v381_v1 = vmax.f32 %v360_v62, 0.0 }
  0xaf   : > { %v372_v30 = vmax.f32 %v337_v28, 0.0 }
  0xb1   : > { %v386_v31 = vpack.c.bf16 %v372_v30, %v371_v29 }
  0xb3   : > { %474 = vmatmul.bf16.gmra.mxu1 %v386_v31  ;;  %v361_v61 = vpop.f32.mrf.mxu3 }
  0xb4   : > { %v339_v32 = vpop.f32.mrf.mxu0  ;;  %v362_v63 = vadd.f32 %v760_v18, %v361_v61 }
  0xb5   : > { %v340_v33 = vadd.f32 %v760_v18, %v339_v32 }
  0xb6   : > { %v382_v2 = vmax.f32 %v362_v63, 0.0 }
  0xb7   : > { %v373_v36 = vmax.f32 %v340_v33, 0.0 }
  0xb8   : > { %v391_v3 = vpack.c.bf16 %v382_v2, %v381_v1 }
  0xbb   : > { %v364_v0 = vpop.f32.mrf.mxu3 }
  0xbc   : > { %v341_v34 = vpop.f32.mrf.mxu0  ;;  %v365_v5 = vadd.f32 %v760_v18, %v364_v0 }
  0xbd   : > { %v342_v35 = vadd.f32 %v760_v18, %v341_v34 }
  0xbe   : > { %v383_v7 = vmax.f32 %v365_v5, 0.0 }
  0xbf   : > { %v374_v37 = vmax.f32 %v342_v35, 0.0 }
  0xc1   : > { %v387_v38 = vpack.c.bf16 %v374_v37, %v373_v36 }
  0xc3   : > { %479 = vmatmul.bf16.gmra.mxu1 %v387_v38  ;;  %v366_v4 = vpop.f32.mrf.mxu3 }
  0xc4   : > { %v344_v39 = vpop.f32.mrf.mxu0  ;;  %v367_v6 = vadd.f32 %v760_v18, %v366_v4 }
  0xc5   : > { %v345_v40 = vadd.f32 %v760_v18, %v344_v39 }
  0xc6   : > { %v384_v8 = vmax.f32 %v367_v6, 0.0 }
  0xc7   : > { %v375_v43 = vmax.f32 %v345_v40, 0.0 }
  0xc8   : > { %v392_v9 = vpack.c.bf16 %v384_v8, %v383_v7 }
  0xcc   : > { %v346_v41 = vpop.f32.mrf.mxu0 }
  0xcd   : > { %v347_v42 = vadd.f32 %v760_v18, %v346_v41 }
  0xcf   : > { %v376_v44 = vmax.f32 %v347_v42, 0.0 }
  0xd1   : > { %v388_v45 = vpack.c.bf16 %v376_v44, %v375_v43 }
  0xd3   : > { %484 = vmatmul.bf16.gmra.mxu1 %v388_v45 }
  0xd4   : > { %v349_v46 = vpop.f32.mrf.mxu0 }
  0xd5   : > { %v350_v48 = vadd.f32 %v760_v18, %v349_v46 }
  0xd7   : > { %v377_v52 = vmax.f32 %v350_v48, 0.0 }
  0xdc   : > { %v351_v49 = vpop.f32.mrf.mxu0 }
  0xdd   : > { %v352_v50 = vadd.f32 %v760_v18, %v351_v49 }
  0xdf   : > { %v378_v53 = vmax.f32 %v352_v50, 0.0 }
  0xe1   : > { %v389_v54 = vpack.c.bf16 %v378_v53, %v377_v52 }
  0xe3   : > { %489 = vmatmul.bf16.vlgmr.msra.gmra.mxu2 %v389_v54 }
  0xf3   : > { %494 = vmatmul.bf16.gmra.mxu2 %v390_v60 }
 0x103   : > { %499 = vmatmul.bf16.gmra.mxu2 %v391_v3 }
 0x113   : > { %504 = vmatmul.bf16.gmra.mxu2 %v392_v9 }
 0x120   : > { %v470_v11 = vpop.f32.mrf.mxu1 }
 0x121   : > { %v471_v12 = vadd.f32 %v761_v10, %v470_v11 }
 0x123   : > { %510 = vst [vmem:[%s954_s23] sm:$0xff] %v471_v12 }
 0x128   : > { %v472_v13 = vpop.f32.mrf.mxu1 }
 0x129   : > { %v473_v14 = vadd.f32 %v761_v10, %v472_v13 }
 0x12b   : > { %511 = vst [vmem:[%s954_s23 + $0x8] sm:$0xff] %v473_v14 }
 0x130   : > { %v475_v15 = vpop.f32.mrf.mxu1 }
 0x131   : > { %v476_v16 = vadd.f32 %v761_v10, %v475_v15 }
 0x133   : > { %512 = vst [vmem:[%s954_s23 + $0x10] sm:$0xff] %v476_v16 }
 0x138   : > { %v477_v17 = vpop.f32.mrf.mxu1 }
 0x139   : > { %v478_v18 = vadd.f32 %v761_v10, %v477_v17 }
 0x13b   : > { %513 = vst [vmem:[%s954_s23 + $0x18] sm:$0xff] %v478_v18 }
 0x140   : > { %v480_v19 = vpop.f32.mrf.mxu1 }
 0x141   : > { %v481_v20 = vadd.f32 %v761_v10, %v480_v19 }
 0x143   : > { %514 = vst [vmem:[%s954_s23 + $0x20] sm:$0xff] %v481_v20 }
 0x148   : > { %v482_v21 = vpop.f32.mrf.mxu1 }
 0x149   : > { %v483_v22 = vadd.f32 %v761_v10, %v482_v21 }
 0x14b   : > { %515 = vst [vmem:[%s954_s23 + $0x28] sm:$0xff] %v483_v22 }
 0x150   : > { %v485_v23 = vpop.f32.mrf.mxu1 }
 0x151   : > { %v486_v24 = vadd.f32 %v761_v10, %v485_v23 }
 0x153   : > { %516 = vst [vmem:[%s954_s23 + $0x30] sm:$0xff] %v486_v24 }
 0x158   : > { %v487_v25 = vpop.f32.mrf.mxu1 }
 0x159   : > { %v488_v26 = vadd.f32 %v761_v10, %v487_v25 }
 0x15b   : > { %517 = vst [vmem:[%s954_s23 + $0x38] sm:$0xff] %v488_v26 }
 0x166   : > { %v490_v27 = vpop.f32.mrf.mxu2 }
 0x167   : > { %v491_v28 = vadd.f32 %v761_v10, %v490_v27 }
 0x169   : > { %518 = vst [vmem:[%s954_s23 + $0x40] sm:$0xff] %v491_v28 }
 0x16e   : > { %v492_v29 = vpop.f32.mrf.mxu2 }
 0x16f   : > { %v493_v30 = vadd.f32 %v761_v10, %v492_v29 }
 0x171   : > { %519 = vst [vmem:[%s954_s23 + $0x48] sm:$0xff] %v493_v30 }
 0x176   : > { %v495_v31 = vpop.f32.mrf.mxu2 }
 0x177   : > { %v496_v32 = vadd.f32 %v761_v10, %v495_v31 }
 0x179   : > { %520 = vst [vmem:[%s954_s23 + $0x50] sm:$0xff] %v496_v32 }
 0x17e   : > { %v497_v33 = vpop.f32.mrf.mxu2 }
 0x17f   : > { %v498_v34 = vadd.f32 %v761_v10, %v497_v33 }
 0x181   : > { %521 = vst [vmem:[%s954_s23 + $0x58] sm:$0xff] %v498_v34 }
 0x186   : > { %v500_v35 = vpop.f32.mrf.mxu2 }
 0x187   : > { %v501_v36 = vadd.f32 %v761_v10, %v500_v35 }
 0x189   : > { %522 = vst [vmem:[%s954_s23 + $0x60] sm:$0xff] %v501_v36 }
 0x18e   : > { %v502_v37 = vpop.f32.mrf.mxu2 }
 0x18f   : > { %v503_v38 = vadd.f32 %v761_v10, %v502_v37 }
 0x191   : > { %523 = vst [vmem:[%s954_s23 + $0x68] sm:$0xff] %v503_v38 }
 0x196   : > { %v505_v39 = vpop.f32.mrf.mxu2 }
 0x197   : > { %v506_v40 = vadd.f32 %v761_v10, %v505_v39 }
 0x199   : > { %524 = vst [vmem:[%s954_s23 + $0x70] sm:$0xff] %v506_v40 }
 0x19e   : > { %v507_v41 = vpop.f32.mrf.mxu2 }
 0x19f   : > { %v508_v42 = vadd.f32 %v761_v10, %v507_v41 }
 0x1a1   : > { %525 = vst [vmem:[%s954_s23 + $0x78] sm:$0xff] %v508_v42 }
 0x1a2   : > { %789 = shalt.err (!%p786_p3)
}
 0x1a3   : > { %s826_s14 = smov 128   ;;  %s827_s17 = smov 8  }
 0x1a4   : > { %719 = dma.vmem_to_hbm [thread:$0]  (%p896_p5), %s540_s7, 2048, %s542_s8, %s527_s9, %s826_s14, %s826_s14, %s827_s17  }
 0x1a5 PF: > { %p725_p4 = scmp.ge.s32.totalorder %s824_s21, 2  ;;  %s556_s23 = sand.u32 1, %s812_s18  }
 0x1a6   : > { %s557_s25 = scalar_lea.sflag [#allocation3], %s556_s23 }
 0x1a7   : > { %p722_p7 = pnand %p725_p4, %p900_p6 }
 0x1a9   : > { %p723_p8 = pneg %p722_p7 }
 0x1ab   : > { %807 = dma.done.wait (%p723_p8), %s557_s25, 2048  }
 0x1ac   : > { %809 = vsyncadd (%p723_p8), %s557_s25, 4294965248  ;;  %p15_p9 = scmp.ge.s32.totalorder %s883_s24, 4   ;;  %s1014_s18 = smov %s816_s19 }
 0x1ad   : > { %s1015_s19 = smov %s820_s20  ;;  %s1016_s20 = smov %s894_s27 }
 0x1ae   : > { %s1017_s21 = smov %s883_s24  ;;  %17 = sbr.rel (!%p15_p9) target bundleno = 3 (0x3), region = 75 }
 0x1b3   :  { %563 = vsyncpa [#allocation3], 1 }
 0x1b4   :  { %565 = vsyncpa [#allocation3 + $0x1], 1 }

</bundles_post_ra>
